<compile_context>
chip_gen: v6e
topology: v6e:2x2x1
jax: 0.10.0
libtpu: 0.0.40
codegen_flags: <defaults>
</compile_context>

<pallas_src>
import math
import numpy as np

import jax
import jax.numpy as jnp
from jax.experimental import pallas as pl
from jax.experimental.pallas import tpu as pltpu


# ----------------------------------------------------------------------------
# Bicubic downsample (BicubicDownSample) as dense matmuls:  out = Mh @ x @ Mw^T
# ----------------------------------------------------------------------------
def _bicubic_weights(factor, a=-0.5):
    size = factor * 4

    def bk(x):
        ax = abs(x)
        if ax <= 1.0:
            return (a + 2.0) * ax ** 3 - (a + 3.0) * ax ** 2 + 1.0
        elif 1.0 < ax < 2.0:
            return a * ax ** 3 - 5.0 * a * ax ** 2 + 8.0 * a * ax - 4.0 * a
        return 0.0

    k = np.array(
        [bk((i - math.floor(size / 2) + 0.5) / factor) for i in range(size)],
        dtype=np.float64,
    )
    k = k / k.sum()
    return k.astype(np.float32)


def _downsample_matrix(n_in, factor):
    """Dense (n_out, n_in) matrix == reflect-pad + 1-D bicubic conv, stride=factor."""
    size = factor * 4
    k = _bicubic_weights(factor)
    pad = size - factor
    pad_lo = pad // 2
    n_pad = n_in + pad
    n_out = (n_pad - size) // factor + 1

    def reflect(i):
        if i < 0:
            return -i
        if i >= n_in:
            return 2 * (n_in - 1) - i
        return i

    M = np.zeros((n_out, n_in), dtype=np.float32)
    for o in range(n_out):
        for t in range(size):
            M[o, reflect(o * factor + t - pad_lo)] += k[t]
    return M


def _tpu_vmem_capacity():
    """Generation-aware VMEM capacity (bytes); conservative fallback."""
    try:
        info = pltpu.get_tpu_info()
        cap = getattr(info, "vmem_capacity_bytes", None)
        if cap:
            return int(cap)
    except Exception:
        pass
    return 128 * 1024 * 1024


def _choose_plane_block(n_planes, H, W, Ho, Wo):
    """Plane-block size P: largest divisor of n_planes that (a) fits a
    generation-aware VMEM budget and (b) leaves >=2 (>=4 if possible) grid
    steps for pipelining / v7x 2-TC sharding."""
    cap = _tpu_vmem_capacity()
    # Scratch budget for per-step plane blocks; leaves headroom for the
    # resident Mh/MwT double-buffers and compiler scratch.
    budget = 10 * 1024 * 1024 if cap <= 64 * 1024 * 1024 else 13 * 1024 * 1024
    per_plane = (2 * 2 * H * W          # bf16 input, double-buffered
                 + 4 * Ho * W           # f32 height-pass intermediate
                 + 4 * Ho * Wo          # f32 width-pass result
                 + 2 * 4 * Ho * Wo      # f32 ref block / image-out, double-buffered
                 + 2 * 4 * 128)         # stats out, double-buffered
    p_cap = max(1, budget // per_plane)
    if n_planes >= 8:
        min_steps = 4
    elif n_planes >= 2:
        min_steps = 2
    else:
        min_steps = 1
    best = 1
    for d in range(1, n_planes + 1):
        if n_planes % d == 0 and d <= p_cap and (n_planes // d) >= min_steps:
            best = d
    return best


def _bicubic_params(N, H, W, Ho, Wo, P, fused):
    steps = N // P
    flops = 2 * N * (Ho * H * W + Ho * W * Wo)
    bytes_accessed = 2 * N * H * W + 2 * (Ho * H + W * Wo) + 4 * N * Ho * Wo
    if fused:
        bytes_accessed += 4 * steps * P * 128
    est_vmem = (2 * 2 * P * H * W              # bf16 input blocks, double-buffered
                + 2 * 2 * (Ho * H + W * Wo)    # bf16 Mh/MwT, double-buffered
                + 4 * P * Ho * W               # f32 height-pass intermediate
                + 4 * P * Ho * Wo              # f32 width-pass result
                + 2 * 4 * P * Ho * Wo          # f32 ref / image-out, double-buffered
                + 2 * 4 * P * 128)             # stats out
    cap = _tpu_vmem_capacity()
    hard_cap = (40 << 20) if cap <= (64 << 20) else (64 << 20)   # v7x: 64 MiB phys/TC
    vmem_limit = int(min(max(est_vmem + (8 << 20), 20 << 20), hard_cap))
    cost = pl.CostEstimate(flops=int(flops), transcendentals=0,
                           bytes_accessed=int(bytes_accessed))
    return steps, vmem_limit, cost


def _downsample_block(x_ref, mh, mwT):
    """Height-first bicubic downsample of a (P,H,W) plane block -> (P,Ho,Wo) f32.

    Dominant matmul is the height pass (N == W, lane-dense); the width pass is
    folded over all P planes in one (P*Ho,W)@(W,Wo) matmul.
    """
    P = x_ref.shape[0]
    Ho, Wo = mh.shape[0], mwT.shape[1]
    ys = []
    for p in range(P):  # P is small & static -> unrolled
        ys.append(jnp.dot(mh, x_ref[p], preferred_element_type=jnp.float32))
    y = ys[0] if P == 1 else jnp.concatenate(ys, axis=0)            # (P*Ho, W) f32
    z = jnp.dot(y.astype(jnp.bfloat16), mwT,
                preferred_element_type=jnp.float32)                 # (P*Ho, Wo) f32
    return z.reshape(P, Ho, Wo)   # leading-dim split only: no lane relayout


def _bicubic_kernel(x_ref, mh_ref, mwT_ref, img_ref):
    z = _downsample_block(x_ref, mh_ref[...], mwT_ref[...])
    img_ref[...] = z.astype(img_ref.dtype)


def _bicubic_loss_kernel(x_ref, mh_ref, mwT_ref, ref_ref, stat_ref):
    P = x_ref.shape[0]
    z = _downsample_block(x_ref, mh_ref[...], mwT_ref[...])        # (P,Ho,Wo) f32
    d = z - ref_ref[...]
    ssq = jnp.sum(d * d, axis=2, keepdims=True).sum(axis=1)        # (P, 1)
    sab = jnp.sum(jnp.abs(d), axis=2, keepdims=True).sum(axis=1)   # (P, 1)
    lane = jax.lax.broadcasted_iota(jnp.int32, (P, 128), 1)
    # lane 0 = sum of squared diffs, lane 1 = sum of abs diffs; full 128-lane
    # store keeps the epilogue write unmasked.
    stat_ref[0] = jnp.where(lane == 0, ssq, jnp.where(lane == 1, sab, 0.0))


def bicubic_downsample(x, factor=None, Mh=None, MwT=None):
    """Standalone downsample (used by get_blur_img and the cross-check)."""
    B, C, H, W = x.shape
    if Mh is None or MwT is None:
        Mh = jnp.asarray(_downsample_matrix(H, factor), jnp.bfloat16)
        MwT = jnp.asarray(_downsample_matrix(W, factor).T, jnp.bfloat16)
    Ho, Wo = Mh.shape[0], MwT.shape[1]
    N = B * C
    P = _choose_plane_block(N, H, W, Ho, Wo)
    steps, vmem_limit, cost = _bicubic_params(N, H, W, Ho, Wo, P, fused=False)
    xp = x.reshape(N, H, W).astype(jnp.bfloat16)
    out = pl.pallas_call(
        _bicubic_kernel,
        grid=(steps,),
        in_specs=[
            pl.BlockSpec((P, H, W), lambda i: (i, 0, 0)),
            pl.BlockSpec((Ho, H), lambda i: (0, 0)),
            pl.BlockSpec((W, Wo), lambda i: (0, 0)),
        ],
        out_specs=pl.BlockSpec((P, Ho, Wo), lambda i: (i, 0, 0)),
        out_shape=jax.ShapeDtypeStruct((N, Ho, Wo), jnp.float32),
        compiler_params=pltpu.CompilerParams(
            dimension_semantics=("parallel",),
            vmem_limit_bytes=vmem_limit),
        cost_estimate=cost,
    )(xp, Mh, MwT)
    return out.reshape(B, C, Ho, Wo).astype(x.dtype)


def bicubic_downsample_with_losses(x, Mh, MwT, ref_planes, P):
    """Downsample x and fuse the L2/L1 partial sums into the kernel epilogue.

    Returns per-plane stats reshaped to (B, C, 128): lane 0 = sum((z-ref)^2),
    lane 1 = sum|z-ref|.  Valid because adaptKernel is identity (see TODO).
    """
    B, C, H, W = x.shape
    Ho, Wo = Mh.shape[0], MwT.shape[1]
    N = B * C
    steps, vmem_limit, cost = _bicubic_params(N, H, W, Ho, Wo, P, fused=True)
    xp = x.reshape(N, H, W).astype(jnp.bfloat16)
    stats = pl.pallas_call(
        _bicubic_loss_kernel,
        grid=(steps,),
        in_specs=[
            pl.BlockSpec((P, H, W), lambda i: (i, 0, 0)),
            pl.BlockSpec((Ho, H), lambda i: (0, 0)),
            pl.BlockSpec((W, Wo), lambda i: (0, 0)),
            pl.BlockSpec((P, Ho, Wo), lambda i: (i, 0, 0)),
        ],
        # (steps, P, 128): the per-step block's last two dims equal the full
        # array dims (constraint-free for any P) and the store is lane-dense.
        out_specs=pl.BlockSpec((1, P, 128), lambda i: (i, 0, 0)),
        out_shape=jax.ShapeDtypeStruct((steps, P, 128), jnp.float32),
        compiler_params=pltpu.CompilerParams(
            dimension_semantics=("parallel",),
            vmem_limit_bytes=vmem_limit),
        cost_estimate=cost,
    )(xp, Mh, MwT, ref_planes)
    return stats.reshape(B, C, 128)


# ----------------------------------------------------------------------------
# GEOCROSS: single-block kernel, batched Gram matrices on the MXU
# ----------------------------------------------------------------------------
def _geocross_kernel(lat_ref, a_ref, b_ref):
    lat = lat_ref[...]                                              # (n, 18, 512)
    g = jnp.einsum("nid,njd->nij", lat, lat,
                   preferred_element_type=jnp.float32)              # batched Gram
    sq = jnp.sum(lat * lat, axis=-1, keepdims=True)                 # (n, 18, 1)
    ones = jnp.ones_like(sq)
    sq_j = jnp.einsum("nio,njo->nij", ones, sq,
                      preferred_element_type=jnp.float32)           # [n,i,j] = sq[n,j]
    s = sq + sq_j                                                   # sq[i] + sq[j]
    # NOTE: the Gram form (s - 2G) can cancel in f32 when two latent rows are
    # nearly identical; the effect on the forward value is negligible (D ~ 0
    # there) but it is a known deviation from the exact direct form.
    a_ref[...] = jnp.sqrt(jnp.maximum(s - 2.0 * g, 0.0) + 1e-9)     # ||xi - xj||
    b_ref[...] = jnp.sqrt(jnp.maximum(s + 2.0 * g, 0.0) + 1e-9)     # ||xi + xj||


def geocross(latent):
    if latent.shape[1] == 1:
        return jnp.float32(0.0)
    lat = latent.reshape(-1, 18, 512).astype(jnp.float32)
    n = lat.shape[0]
    A, Bm = pl.pallas_call(
        _geocross_kernel,
        grid=(1,),
        in_specs=[pl.BlockSpec((n, 18, 512), lambda i: (0, 0, 0))],
        out_specs=(
            pl.BlockSpec((n, 18, 18), lambda i: (0, 0, 0)),
            pl.BlockSpec((n, 18, 18), lambda i: (0, 0, 0)),
        ),
        out_shape=(
            jax.ShapeDtypeStruct((n, 18, 18), jnp.float32),
            jax.ShapeDtypeStruct((n, 18, 18), jnp.float32),
        ),
        compiler_params=pltpu.CompilerParams(
            dimension_semantics=("arbitrary",)),
    )(lat)
    # TODO(synk): atan2 + the tiny (n,18,18) mean stay in JAX glue; the
    # 512-wide pairwise reductions run in-kernel on the MXU.
    D = 2.0 * jnp.arctan2(A, Bm)
    return ((D ** 2 * 512.0).mean((1, 2)) / 8.0).sum()


# ----------------------------------------------------------------------------
# LossBuilderStyleGAN equivalent
# ----------------------------------------------------------------------------
class LossBuilderStyleGANPallas:
    def __init__(self, ref_im, opt):
        assert ref_im.shape[2] == ref_im.shape[3]
        self.ref_im = jnp.asarray(ref_im, jnp.float32)
        self.parsed_loss = [t.split("*") for t in opt["loss_str"].split("+")]
        self.eps = float(opt["eps"])
        B, C, im_size, _ = self.ref_im.shape
        self.B, self.C = B, C
        self.factor = opt["output_size"] // im_size
        assert im_size * self.factor == opt["output_size"]
        out_size = opt["output_size"]
        self.Ho = self.Wo = im_size
        self.H = self.W = out_size
        self.F = C * im_size * im_size
        self.N = B * C

        # Dense downsample matrices cached once on device in bf16 (downsample
        # is HBM-bandwidth bound; the MXU still accumulates in f32).
        M = _downsample_matrix(out_size, self.factor)          # (im_size, out_size)
        self.Mh = jnp.asarray(M, jnp.bfloat16)                 # (Ho, H)
        self.MwT = jnp.asarray(M.T, jnp.bfloat16)              # (W, Wo)  (square imgs)

        # Plane-block size chosen once (all shapes are known here).
        self.P = _choose_plane_block(self.N, self.H, self.W, self.Ho, self.Wo)
        # Cached reference planes in the same (N, Ho, Wo) order as gen_im planes.
        self.ref_planes = self.ref_im.reshape(self.N, self.Ho, self.Wo)

        # TODO(synk): self.D = KernelWizard(...) is a pretrained encoder/decoder
        # CNN loaded from a .pth checkpoint; adaptKernel is identity here.  The
        # L2/L1 fusion into the downsample epilogue is only valid under that
        # identity; with a real adaptKernel, run it between two kernels instead.

    def _adapt_kernel(self, x_lr, kernel):
        return x_lr  # see TODO above

    def get_blur_img(self, sharp_img, kernel):
        lr = bicubic_downsample(sharp_img, self.factor, self.Mh, self.MwT)
        return jnp.clip(self._adapt_kernel(lr, kernel), 0.0, 1.0)

    def forward(self, latent, gen_im, kernel, step):
        stats = bicubic_downsample_with_losses(gen_im, self.Mh, self.MwT,
                                               self.ref_planes, self.P)
        ssq = stats[:, :, 0].sum(axis=1)                      # (B,) sum (z-ref)^2
        sab = stats[:, :, 1].sum(axis=1)                      # (B,) sum |z-ref|
        inv = 1.0 / float(self.F)
        l2 = jnp.maximum(ssq * inv, self.eps).sum()
        l1 = 10.0 * jnp.maximum(sab * inv, self.eps).sum()
        knorm = jnp.sqrt(jnp.sum(kernel.astype(jnp.float32) ** 2))

        loss_fns = {"L2": lambda: l2, "L1": lambda: l1,
                    "GEOCROSS": lambda: geocross(latent)}
        loss = jnp.float32(0.0)
        losses = {}
        for weight, loss_type in self.parsed_loss:
            tmp_loss = loss_fns[loss_type]()
            losses[loss_type] = tmp_loss
            loss = loss + float(weight) * tmp_loss
        loss = loss + 5e-5 * knorm
        losses["Norm"] = knorm
        return loss, losses


if __name__ == "__main__":
    key = jax.random.PRNGKey(0)
    k1, k2, k3, k4 = jax.random.split(key, 4)

    B, C = 2, 3
    im_size, output_size = 16, 32

    ref_im = jax.random.uniform(k1, (B, C, im_size, im_size), jnp.float32)
    gen_im = jax.random.uniform(k2, (B, C, output_size, output_size), jnp.float32)
    latent = jax.random.normal(k3, (B, 18, 512), jnp.float32)
    kernel = 0.1 * jax.random.normal(k4, (B, 8, 4, 4), jnp.float32)

    opt = {"loss_str": "100*L2+1.0*L1+0.1*GEOCROSS", "eps": 1e-8,
           "output_size": output_size}

    builder = LossBuilderStyleGANPallas(ref_im, opt)
    loss, losses = builder.forward(latent, gen_im, kernel, step=0)

    loss = jax.block_until_ready(loss)
    for v in losses.values():
        jax.block_until_ready(v)
    assert bool(jnp.isfinite(loss))

    # ---- cross-check: the fused L2/L1 stats vs plain-JAX reductions over the
    # SAME Pallas downsample output (validates the fused reduction, not bf16).
    gen_lr = bicubic_downsample(gen_im, builder.factor, builder.Mh, builder.MwT)
    d = gen_lr - ref_im
    l2_ref = jnp.maximum((d ** 2).mean((1, 2, 3)), opt["eps"]).sum()
    l1_ref = 10.0 * jnp.maximum(jnp.abs(d).mean((1, 2, 3)), opt["eps"]).sum()
    X = latent.reshape(-1, 1, 18, 512)
    Y = latent.reshape(-1, 18, 1, 512)
    A = jnp.sqrt(((X - Y) ** 2).sum(-1) + 1e-9)
    Bm = jnp.sqrt(((X + Y) ** 2).sum(-1) + 1e-9)
    geo_ref = (((2.0 * jnp.arctan2(A, Bm)) ** 2 * 512.0).mean((1, 2)) / 8.0).sum()
    norm_ref = jnp.sqrt((kernel ** 2).sum())
    assert jnp.allclose(losses["L2"], l2_ref, rtol=1e-3, atol=1e-5)
    assert jnp.allclose(losses["L1"], l1_ref, rtol=1e-3, atol=1e-5)
    assert jnp.allclose(losses["GEOCROSS"], geo_ref, rtol=1e-3, atol=1e-3)
    assert jnp.allclose(losses["Norm"], norm_ref, rtol=1e-3, atol=1e-5)

    print("KERNEL_OK")
</pallas_src>

<mosaic_0001>
module attributes {stable_mosaic.version = 11 : i64} {
  func.func @_bicubic_loss_kernel(%arg0: i32, %arg1: memref<3x32x32xbf16, #tpu.memory_space<vmem>>, %arg2: memref<16x32xbf16, #tpu.memory_space<vmem>>, %arg3: memref<32x16xbf16, #tpu.memory_space<vmem>>, %arg4: memref<3x16x16xf32, #tpu.memory_space<vmem>>, %arg5: memref<1x3x128xf32, #tpu.memory_space<vmem>>) attributes {dimension_semantics = [#tpu.dimension_semantics<parallel>], iteration_bounds = array<i64: 2>, scalar_prefetch = 0 : i64, scratch_operands = 0 : i64, tpu.core_type = #tpu.core_type<tc>, window_params = [{transform_indices = @transform_0, window_bounds = array<i64: 3, 32, 32>}, {pipeline_mode = #tpu.pipeline_mode<synchronous>, transform_indices = @transform_1, window_bounds = array<i64: 16, 32>}, {pipeline_mode = #tpu.pipeline_mode<synchronous>, transform_indices = @transform_2, window_bounds = array<i64: 32, 16>}, {transform_indices = @transform_3, window_bounds = array<i64: 3, 16, 16>}, {transform_indices = @transform_4, window_bounds = array<i64: 1, 3, 128>}]} {
    %c0 = arith.constant 0 : index
    %c0_0 = arith.constant 0 : index
    %0 = vector.load %arg2[%c0, %c0_0] : memref<16x32xbf16, #tpu.memory_space<vmem>>, vector<16x32xbf16>
    %c0_1 = arith.constant 0 : index
    %c0_2 = arith.constant 0 : index
    %1 = vector.load %arg3[%c0_1, %c0_2] : memref<32x16xbf16, #tpu.memory_space<vmem>>, vector<32x16xbf16>
    %c0_3 = arith.constant 0 : index
    %c0_4 = arith.constant 0 : index
    %c0_5 = arith.constant 0 : index
    %2 = vector.load %arg1[%c0_3, %c0_4, %c0_5] : memref<3x32x32xbf16, #tpu.memory_space<vmem>>, vector<1x32x32xbf16>
    %3 = vector.shape_cast %2 : vector<1x32x32xbf16> to vector<32x32xbf16>
    %cst = arith.constant dense<0.000000e+00> : vector<16x32xf32>
    %4 = tpu.matmul %0, %3, %cst {dimension_numbers = #tpu.dot_dimension_numbers<[1], [0], [0], [1], [0, 0, 1, 1], [], []>} : vector<16x32xbf16>, vector<32x32xbf16>, vector<16x32xf32> -> vector<16x32xf32>
    %c1 = arith.constant 1 : index
    %c0_6 = arith.constant 0 : index
    %c0_7 = arith.constant 0 : index
    %5 = vector.load %arg1[%c1, %c0_6, %c0_7] : memref<3x32x32xbf16, #tpu.memory_space<vmem>>, vector<1x32x32xbf16>
    %6 = vector.shape_cast %5 : vector<1x32x32xbf16> to vector<32x32xbf16>
    %cst_8 = arith.constant dense<0.000000e+00> : vector<16x32xf32>
    %7 = tpu.matmul %0, %6, %cst_8 {dimension_numbers = #tpu.dot_dimension_numbers<[1], [0], [0], [1], [0, 0, 1, 1], [], []>} : vector<16x32xbf16>, vector<32x32xbf16>, vector<16x32xf32> -> vector<16x32xf32>
    %c2 = arith.constant 2 : index
    %c0_9 = arith.constant 0 : index
    %c0_10 = arith.constant 0 : index
    %8 = vector.load %arg1[%c2, %c0_9, %c0_10] : memref<3x32x32xbf16, #tpu.memory_space<vmem>>, vector<1x32x32xbf16>
    %9 = vector.shape_cast %8 : vector<1x32x32xbf16> to vector<32x32xbf16>
    %cst_11 = arith.constant dense<0.000000e+00> : vector<16x32xf32>
    %10 = tpu.matmul %0, %9, %cst_11 {dimension_numbers = #tpu.dot_dimension_numbers<[1], [0], [0], [1], [0, 0, 1, 1], [], []>} : vector<16x32xbf16>, vector<32x32xbf16>, vector<16x32xf32> -> vector<16x32xf32>
    %11 = tpu.concatenate %4, %7, %10 in 0 : vector<16x32xf32>, vector<16x32xf32>, vector<16x32xf32> -> vector<48x32xf32>
    %12 = arith.truncf %11 : vector<48x32xf32> to vector<48x32xbf16>
    %cst_12 = arith.constant dense<0.000000e+00> : vector<48x16xf32>
    %13 = tpu.matmul %12, %1, %cst_12 {dimension_numbers = #tpu.dot_dimension_numbers<[1], [0], [0], [1], [0, 0, 1, 1], [], []>} : vector<48x32xbf16>, vector<32x16xbf16>, vector<48x16xf32> -> vector<48x16xf32>
    %14 = vector.shape_cast %13 : vector<48x16xf32> to vector<3x16x16xf32>
    %c0_13 = arith.constant 0 : index
    %c0_14 = arith.constant 0 : index
    %c0_15 = arith.constant 0 : index
    %15 = vector.load %arg4[%c0_13, %c0_14, %c0_15] : memref<3x16x16xf32, #tpu.memory_space<vmem>>, vector<3x16x16xf32>
    %16 = arith.subf %14, %15 : vector<3x16x16xf32>
    %17 = arith.mulf %16, %16 : vector<3x16x16xf32>
    %cst_16 = arith.constant dense<0.000000e+00> : vector<3x16xf32>
    %18 = vector.multi_reduction <add>, %17, %cst_16 [2] : vector<3x16x16xf32> to vector<3x16xf32>
    %19 = vector.shape_cast %18 : vector<3x16xf32> to vector<3x16x1xf32>
    %cst_17 = arith.constant dense<0.000000e+00> : vector<3x1xf32>
    %20 = vector.multi_reduction <add>, %19, %cst_17 [1] : vector<3x16x1xf32> to vector<3x1xf32>
    %21 = math.absf %16 : vector<3x16x16xf32>
    %cst_18 = arith.constant dense<0.000000e+00> : vector<3x16xf32>
    %22 = vector.multi_reduction <add>, %21, %cst_18 [2] : vector<3x16x16xf32> to vector<3x16xf32>
    %23 = vector.shape_cast %22 : vector<3x16xf32> to vector<3x16x1xf32>
    %cst_19 = arith.constant dense<0.000000e+00> : vector<3x1xf32>
    %24 = vector.multi_reduction <add>, %23, %cst_19 [1] : vector<3x16x1xf32> to vector<3x1xf32>
    %25 = tpu.iota {dimensions = array<i32: 1>} : vector<3x128xi32>
    %c0_i32 = arith.constant 0 : i32
    %26 = vector.broadcast %c0_i32 : i32 to vector<3x128xi32>
    %27 = arith.cmpi eq, %25, %26 : vector<3x128xi32>
    %c1_i32 = arith.constant 1 : i32
    %28 = vector.broadcast %c1_i32 : i32 to vector<3x128xi32>
    %29 = arith.cmpi eq, %25, %28 : vector<3x128xi32>
    %cst_20 = arith.constant 0.000000e+00 : f32
    %30 = vector.shape_cast %24 : vector<3x1xf32> to vector<3x1xf32>
    %31 = vector.broadcast %30 : vector<3x1xf32> to vector<3x128xf32>
    %32 = vector.broadcast %cst_20 : f32 to vector<3x128xf32>
    %33 = arith.select %29, %31, %32 : vector<3x128xi1>, vector<3x128xf32>
    %34 = vector.shape_cast %20 : vector<3x1xf32> to vector<3x1xf32>
    %35 = vector.broadcast %34 : vector<3x1xf32> to vector<3x128xf32>
    %36 = arith.select %27, %35, %33 : vector<3x128xi1>, vector<3x128xf32>
    %c0_21 = arith.constant 0 : index
    %c0_22 = arith.constant 0 : index
    %c0_23 = arith.constant 0 : index
    %37 = vector.load %arg5[%c0_21, %c0_22, %c0_23] : memref<1x3x128xf32, #tpu.memory_space<vmem>>, vector<1x3x128xf32>
    %38 = vector.shape_cast %37 : vector<1x3x128xf32> to vector<3x128xf32>
    %39 = vector.shape_cast %36 : vector<3x128xf32> to vector<1x3x128xf32>
    tpu.vector_store %arg5[%c0_21, %c0_22, %c0_23], %39 {strides = array<i32>} : memref<1x3x128xf32, #tpu.memory_space<vmem>>, vector<1x3x128xf32>,
    return
  }
  func.func @transform_0(%arg0: i32) -> (i32, i32, i32) {
    %c0_i32 = arith.constant 0 : i32
    %c0_i32_0 = arith.constant 0 : i32
    %c0_i32_1 = arith.constant 0 : i32
    return %arg0, %c0_i32, %c0_i32_0 : i32, i32, i32
  }
  func.func @transform_1(%arg0: i32) -> (i32, i32) {
    %c0_i32 = arith.constant 0 : i32
    %c0_i32_0 = arith.constant 0 : i32
    %c0_i32_1 = arith.constant 0 : i32
    return %c0_i32, %c0_i32_0 : i32, i32
  }
  func.func @transform_2(%arg0: i32) -> (i32, i32) {
    %c0_i32 = arith.constant 0 : i32
    %c0_i32_0 = arith.constant 0 : i32
    %c0_i32_1 = arith.constant 0 : i32
    return %c0_i32, %c0_i32_0 : i32, i32
  }
  func.func @transform_3(%arg0: i32) -> (i32, i32, i32) {
    %c0_i32 = arith.constant 0 : i32
    %c0_i32_0 = arith.constant 0 : i32
    %c0_i32_1 = arith.constant 0 : i32
    return %arg0, %c0_i32, %c0_i32_0 : i32, i32, i32
  }
  func.func @transform_4(%arg0: i32) -> (i32, i32, i32) {
    %c0_i32 = arith.constant 0 : i32
    %c0_i32_0 = arith.constant 0 : i32
    %c0_i32_1 = arith.constant 0 : i32
    return %arg0, %c0_i32, %c0_i32_0 : i32, i32, i32
  }
}

</mosaic_0001>

<bundles_post_ra>
// kernel: tpu_custom_call.1
= control target key start
LH: loop header
LB: loop body
LE: loop exit
PB: predicated region body
PF: predicated region fallthrough
CT: control target
= control target key end

     0   :  { %9 = vsyncpa [#allocation3], 0  ;;  %s1236_s0 = inlined_call_operand.hbm [shape: bf16[6,32,32], index: 0, kind: input, shape index: {}]   ;;  %s1237_s1 = inlined_call_operand.vmem [shape: bf16[16,32], index: 1, kind: input, shape index: {}]   ;;  %s1238_s2 = inlined_call_operand.vmem [shape: bf16[32,16], index: 2, kind: input, shape index: {}]   ;;  %s1239_s3 = inlined_call_operand.hbm [shape: f32[6,16,16], index: 3, kind: input, shape index: {}]   ;;  %s1240_s4 = inlined_call_operand.vmem [shape: f32[2,3,128], index: 4, kind: output, shape index: {}]  }
   0x1   :  { %11 = vsyncpa [#allocation3 + $0x1], 0 }
   0x2   :  { %12 = vsyncpa [#allocation5], 0 }
   0x3   :  { %14 = vsyncpa [#allocation5 + $0x1], 0  ;;  %s1027_s15 = smov 0   ;;  %s1029_s16 = smov 0  }
   0x4   :  { %s1031_s17 = smov 0   ;;  %s1033_s18 = smov 0  }
   0x5 LB: > { %s1046_s19 = sadd.s32 4294967295, %s992_s18   ;;  %s1049_s20 = sadd.s32 1, %s992_s18   ;;  %s992_s18 = sphi %s1033_s18, %s1250_s18   ;;  %s988_s17 = sphi %s1031_s17, %s1249_s17   ;;  %s984_s16 = sphi %s1029_s16, %s1248_s16   ;;  %s980_s15 = sphi %s1027_s15, %s1247_s15  }
   0x6   : > { %s24_s21 = ssub.s32 %s992_s18, %s1049_s20  ;;  %s27_s22 = sadd.s32 1, %s988_s17 }
   0x7   : > { %p25_p0 = scmp.eq.s32.totalorder %s24_s21, 0  ;;  %p34_p1 = scmp.ne.s32.totalorder %s988_s17, %s984_s16 }
   0x8   : > { %p35_p2 = scmp.eq.s32.totalorder %s992_s18, 0  ;;  %p40_p3 = scmp.ne.s32.totalorder %s984_s16, %s980_s15 }
   0x9   : > { %s1059_s23 = scalar_select %p25_p0, %s988_s17, %s27_s22  }
   0xa   : > { %p36_p4 = por %p35_p2, %p34_p1  ;;  %p41_p5 = scmp.eq.s32.totalorder %s1046_s19, 0 }
   0xb   : > { %p850_p6 = scmp.lt.s32.totalorder %s992_s18, 2  ;;  %s1068_s25 = sand.u32 1, %s988_s17  }
   0xc   : > { %p1063_p7 = por %p41_p5, %p40_p3  ;;  %s836_s26 = smul.u32 48, %s1068_s25 }
   0xd   : > { %s780_s27 = smul.u32 768, %s992_s18  ;;  %p1072_p8 = pnand %p850_p6, %p36_p4 }
   0xe   : > { %s1242_s24 = scalar_select %p1063_p7, 1, 0 }
   0xf   : > { %s1081_s5 = scalar_lea.hbm %s1236_s0, %s780_s27  ;;  %s168_s6 = scalar_lea.vmem [#allocation2], %s836_s26 }
  0x10   : > { %s176_s7 = sshll.u32 %s168_s6, 4  ;;  %s165_s8 = scalar_lea.sflag [#allocation3], %s1068_s25  ;;  %s1085_s7 = int_to_ptr.vmem [resolvable:$true] %s176_s7 }
  0x11   : > { %s898_s9 = scalar_lea.hbm %s1081_s5, 768  ;;  %p900_p11 = pneg %p1072_p8 }
  0x12   : > { %p899_p10 = scmp.ne.s32.totalorder %s1081_s5, %s898_s9  ;;  %s903_s12 = scalar_lea.hbm %s1236_s0, 1536 }
  0x13   : > { %p904_p0 = scmp.lt.s32.totalorder %s1081_s5, %s1236_s0  ;;  %p905_p1 = scmp.lt.s32.totalorder %s903_s12, %s898_s9 }
  0x14   : > { %p901_p12 = pnand %p900_p11, %p899_p10 }
  0x15   : > { %p906_p2 = por %p905_p1, %p904_p0 }
  0x16   : > { %p902_p13 = pneg %p901_p12 }
  0x18   : > { %p907_p3 = pnand %p906_p2, %p902_p13 }
  0x1a   : > { %910 = shalt.err (!%p907_p3)
}
  0x1b   : > { %s911_s15 = scalar_lea.vmem %s1085_s7, 768  ;;  %s994_s21 = smov [#allocation2]  }
  0x1c   : > { %p912_p4 = scmp.ne.s32.totalorder %s1085_s7, %s911_s15  ;;  %s916_s22 = sshll.u32 %s994_s21, 4  ;;  %s917_s22 = int_to_ptr.vmem [resolvable:$false] %s916_s22 }
  0x1d   : > { %s918_s29 = scalar_lea.vmem %s917_s22, 1536  ;;  %p919_p10 = scmp.lt.s32.totalorder %s1085_s7, %s917_s22 }
  0x1e   : > { %p914_p5 = pnand %p912_p4, %p900_p11  ;;  %p920_p12 = scmp.lt.s32.totalorder %s918_s29, %s911_s15 }
  0x20   : > { %p915_p6 = pneg %p914_p5  ;;  %p921_p9 = por %p920_p12, %p919_p10 }
  0x22   : > { %p922_p0 = pnand %p921_p9, %p915_p6 }
  0x24   : > { %925 = shalt.err (!%p922_p0)
}
  0x25   : > { %s995_s30 = smov 64   ;;  %s996_s6 = smov 4  }
  0x26   : > { %846 = dma.hbm_to_vmem [thread:$0]  (!%p1072_p8), %s1081_s5, 768, %s1085_s7, %s165_s8, %s995_s30, %s995_s30, %s996_s6  }
  0x27   : > { %p206_p13 = scmp.lt.s32.totalorder %s992_s18, 3  ;;  %s1121_s11 = scalar_lea.hbm %s1239_s3, %s780_s27 }
  0x28   : > { %p1244_p9 = scmp.ge.s32.totalorder %s992_s18, 1  ;;  %s190_s13 = scalar_lea.vmem [#allocation4], %s836_s26 }
  0x29   : > { %s198_s14 = sshll.u32 %s190_s13, 4  ;;  %s187_s5 = scalar_lea.sflag [#allocation5], %s1068_s25  ;;  %s1131_s14 = int_to_ptr.vmem [resolvable:$true] %s198_s14 }
  0x2a   : > { %p1125_p1 = pnand %p1244_p9, %p206_p13  ;;  %s926_s7 = scalar_lea.hbm %s1121_s11, 768 }
  0x2b   : > { %p927_p2 = scmp.ne.s32.totalorder %s1121_s11, %s926_s7  ;;  %s931_s8 = scalar_lea.hbm %s1239_s3, 1536 }
  0x2c   : > { %p932_p5 = scmp.lt.s32.totalorder %s1121_s11, %s1239_s3  ;;  %p933_p6 = scmp.lt.s32.totalorder %s931_s8, %s926_s7 }
  0x2d   : > { %p929_p3 = pnand %p927_p2, %p900_p11 }
  0x2e   : > { %p934_p10 = por %p933_p6, %p932_p5 }
  0x2f   : > { %p930_p4 = pneg %p929_p3 }
  0x31   : > { %p935_p12 = pnand %p934_p10, %p930_p4 }
  0x33   : > { %938 = shalt.err (!%p935_p12)
}
  0x34   : > { %s939_s26 = scalar_lea.vmem %s1131_s14, 768  ;;  %s997_s22 = smov [#allocation4]  }
  0x35   : > { %p940_p0 = scmp.ne.s32.totalorder %s1131_s14, %s939_s26  ;;  %s944_s29 = sshll.u32 %s997_s22, 4  ;;  %s945_s29 = int_to_ptr.vmem [resolvable:$false] %s944_s29 }
  0x36   : > { %s946_s30 = scalar_lea.vmem %s945_s29, 1536  ;;  %p947_p2 = scmp.lt.s32.totalorder %s1131_s14, %s945_s29 }
  0x37   : > { %p942_p13 = pnand %p940_p0, %p900_p11  ;;  %p948_p3 = scmp.lt.s32.totalorder %s946_s30, %s939_s26 }
  0x39   : > { %p943_p9 = pneg %p942_p13  ;;  %p949_p7 = por %p948_p3, %p947_p2 }
  0x3b   : > { %p950_p5 = pnand %p949_p7, %p943_p9 }
  0x3d   : > { %953 = shalt.err (!%p950_p5)
}
  0x3e   : > { %s998_s6 = smov 128   ;;  %s999_s9 = smov 8  }
  0x3f   : > { %849 = dma.hbm_to_vmem [thread:$0]  (!%p1072_p8), %s1121_s11, 768, %s1131_s14, %s187_s5, %s998_s6, %s998_s6, %s999_s9  }
  0x40   : > { %210 = sbr.rel (%p1125_p1) target bundleno = 658 (0x292), region = 36  ;;  %s212_s10 = sand.u32 (!%p1125_p1), 1, %s984_s16  }
  0x41   : > { %s838_s13 = smul.u32 (!%p1125_p1), 48, %s212_s10  ;;  %s213_s7 = scalar_lea.sflag (!%p1125_p1), [#allocation3], %s212_s10 }
  0x42   : > { %p1246_p7 = scmp.ne.s32.totalorder (!%p1125_p1), %s1242_s24, 0 }
  0x43   : > { %s1161_s18 = scalar_lea.vmem (!%p1125_p1), [#allocation2], %s838_s13 }
  0x45   : > { %971 = dma.done.wait (%p1246_p7), %s213_s7, 768  }
  0x46   : > { %973 = vsyncadd (%p1246_p7), %s213_s7, 4294966528  ;;  %s222_s27 = scalar_lea.sflag [#allocation5], %s212_s10  ;;  %s1167_s28 = scalar_lea.vmem [#allocation4], %s838_s13 }
  0x47   : > { %975 = dma.done.wait (%p1246_p7), %s222_s27, 768  }
  0x48   : > { %977 = vsyncadd (%p1246_p7), %s222_s27, 4294966528  ;;  %v1000_v0 = vmov 0.0   ;;  %vm1001_vm0 = vmmov 0   ;;  %v889_v1 = vld [vmem:[%s1161_s18 + $0x8] sm:$0xff]   ;;  %v890_v2 = vld [vmem:[%s1161_s18] sm:$0xff]   ;;  %vm288_vm1 = vcmask 261120  }
  0x49   : > { %796 = vmatprep.subr.bf16.mxu0 %v1000_v0  ;;  %800 = vmatprep.mubr.msk.bf16.mxu0 %vm1001_vm0, %v1000_v0  ;;  %v891_v3 = vld [vmem:[%s1237_s1] sm:$0xff]   ;;  %v892_v4 = vld [vmem:[%s1161_s18 + $0x18] sm:$0xff]   ;;  %v894_v6 = vld [vmem:[%s1161_s18 + $0x28] sm:$0xff]   ;;  %vm548_vm2 = vcmask 130048   ;;  %p256_p8 = scmp.lt.s32.totalorder %s1046_s19, 1  ;;  %vm640_vm3 = vcmask 1041409  }
  0x4a   : > { %820 = vmatprep.subr.bf16.mxu1 %v1000_v0  ;;  %824 = vmatprep.mubr.msk.bf16.mxu1 %vm1001_vm0, %v1000_v0  ;;  %v893_v5 = vld [vmem:[%s1161_s18 + $0x10] sm:$0xff]   ;;  %v895_v7 = vld [vmem:[%s1161_s18 + $0x20] sm:$0xff]   ;;  %v896_v8 = vld [vmem:[%s1238_s2 + $0x8] sm:$0xff]   ;;  %vm642_vm4 = vcmask 1042434  }
  0x4b   : > { %797 = vmatpush3.bf16.msra.mxu0 %v889_v1  ;;  %821 = vmatpush3.bf16.msra.mxu1 %v896_v8  ;;  %v897_v9 = vld [vmem:[%s1238_s2] sm:$0xff]   ;;  %v531_v29 = vld [vmem:[%s1167_s28 + $0x8] sm:$0xff]  ;;  %v533_v44 = vld [vmem:[%s1167_s28 + $0x18] sm:$0xff]  ;;  %s1252_s19 = smov (!%p256_p8, %s1046_s19), 1 }
  0x4c   : > { %798 = vmatprep.subr.bf16.mxu0 %v1000_v0  ;;  %822 = vmatprep.subr.bf16.mxu1 %v1000_v0  ;;  %v530_v25 = vld [vmem:[%s1167_s28] sm:$0xff]  ;;  %v532_v36 = vld [vmem:[%s1167_s28 + $0x10] sm:$0xff]  ;;  %v535_v60 = vld [vmem:[%s1167_s28 + $0x28] sm:$0xff]  ;;  %s750_s8 = sshll.u32 %s1252_s19, 2 }
  0x4d   : > { %v534_v52 = vld [vmem:[%s1167_s28 + $0x20] sm:$0xff]  ;;  %s259_s26 = scalar_lea.vmem %s1240_s4, %s750_s8 }
  0x4f   : > { %799 = vmatpush3.bf16.msra.mxu0 %v890_v2  ;;  %823 = vmatpush3.bf16.msra.mxu1 %v897_v9 }
  0x50   : > { %804 = vmatprep.subr.bf16.mxu0 %v1000_v0 }
  0x52   : > { %801 = vmatmul.mubr.msk.bf16.vlgmr.msra.gmra.mxu0 %vm288_vm1, %v891_v3 }
  0x53   : > { %805 = vmatpush3.bf16.msra.mxu0 %v892_v4  ;;  %808 = vmatprep.mubr.msk.bf16.mxu0 %vm1001_vm0, %v1000_v0 }
  0x54   : > { %806 = vmatprep.subr.bf16.mxu0 %v1000_v0 }
  0x57   : > { %807 = vmatpush3.bf16.msra.mxu0 %v893_v5 }
  0x58   : > { %812 = vmatprep.subr.bf16.mxu0 %v1000_v0 }
  0x5a   : > { %809 = vmatmul.mubr.msk.bf16.vlgmr.msra.gmra.mxu0 %vm288_vm1, %v891_v3 }
  0x5b   : > { %813 = vmatpush3.bf16.msra.mxu0 %v894_v6  ;;  %816 = vmatprep.mubr.msk.bf16.mxu0 %vm1001_vm0, %v1000_v0 }
  0x5c   : > { %814 = vmatprep.subr.bf16.mxu0 %v1000_v0 }
  0x5f   : > { %815 = vmatpush3.bf16.msra.mxu0 %v895_v7 }
  0x62   : > { %817 = vmatmul.mubr.msk.bf16.vlgmr.msra.gmra.mxu0 %vm288_vm1, %v891_v3 }
 0x112   : > { %v326_v10 = vpop.f32.mrf.mxu0 }
 0x114   : > { %v802_v11 = vpop.f32.mrf.mxu0 }
 0x116   : > { %v329_v12 = vpop.f32.mrf.mxu0 }
 0x117   : > { %v449_v13 = vpack.c.bf16 %v329_v12, %v326_v10 }
 0x118   : > { %v803_v14 = vpop.f32.mrf.mxu0 }
 0x119   : > { %825 = vmatmul.mubr.msk.bf16.vlgmr.msra.gmra.mxu1 %vm288_vm1, %v449_v13 }
 0x11a   : > { %v384_v15 = vpop.f32.mrf.mxu0  ;;  %828 = vmatprep.mubr.msk.bf16.mxu1 %vm1001_vm0, %v1000_v0 }
 0x11c   : > { %v810_v16 = vpop.f32.mrf.mxu0 }
 0x11e   : > { %v387_v17 = vpop.f32.mrf.mxu0 }
 0x11f   : > { %v450_v18 = vpack.c.bf16 %v387_v17, %v384_v15 }
 0x120   : > { %v811_v19 = vpop.f32.mrf.mxu0 }
 0x121   : > { %829 = vmatmul.mubr.msk.bf16.gmra.mxu1 %vm288_vm1, %v450_v18 }
 0x122   : > { %v442_v20 = vpop.f32.mrf.mxu0  ;;  %832 = vmatprep.mubr.msk.bf16.mxu1 %vm1001_vm0, %v1000_v0 }
 0x124   : > { %v818_v21 = vpop.f32.mrf.mxu0 }
 0x126   : > { %v445_v22 = vpop.f32.mrf.mxu0 }
 0x127   : > { %v451_v23 = vpack.c.bf16 %v445_v22, %v442_v20 }
 0x128   : > { %v819_v24 = vpop.f32.mrf.mxu0 }
 0x129   : > { %833 = vmatmul.mubr.msk.bf16.gmra.mxu1 %vm288_vm1, %v451_v23 }
 0x1d9   : > { %v507_v26 = vpop.f32.mrf.mxu1 }
 0x1da   : > { %v536_v27 = vsub.f32 %v507_v26, %v530_v25 }
 0x1db   : > { %v826_v28 = vpop.f32.mrf.mxu1 }
 0x1dc   : > { %v588_v30 = vand.u32 2147483647, %v536_v27  ;;  %v542_v34 = vmul.f32 %v536_v27, %v536_v27 }
 0x1dd   : > { %v510_v31 = vpop.f32.mrf.mxu1 }
 0x1de   : > { %v537_v32 = vsub.f32 %v510_v31, %v531_v29  ;;  %v594_v33 = vsel %vm548_vm2, %v588_v30, 0.0  ;;  %v549_v40 = vsel %vm548_vm2, %v542_v34, 0.0 }
 0x1df   : > { %595 = vadd.xlane.f32.xlu0 %v594_v33  ;;  %v827_v35 = vpop.f32.mrf.mxu1 }
 0x1e0   : > { %v543_v37 = vmul.f32 %v537_v32, %v537_v32  ;;  %v589_v42 = vand.u32 2147483647, %v537_v32 }
 0x1e1   : > { %v515_v38 = vpop.f32.mrf.mxu1 }
 0x1e2   : > { %v538_v39 = vsub.f32 %v515_v38, %v532_v36  ;;  %v552_v41 = vsel %vm548_vm2, %v543_v37, 0.0  ;;  %v597_v48 = vsel %vm548_vm2, %v589_v42, 0.0 }
 0x1e3   : > { %550 = vadd.xlane.f32.xlu0 %v549_v40  ;;  %553 = vadd.xlane.f32.xlu1 %v552_v41  ;;  %v830_v43 = vpop.f32.mrf.mxu1 }
 0x1e4   : > { %v590_v45 = vand.u32 2147483647, %v538_v39  ;;  %v544_v50 = vmul.f32 %v538_v39, %v538_v39 }
 0x1e5   : > { %v518_v46 = vpop.f32.mrf.mxu1 }
 0x1e6   : > { %v539_v47 = vsub.f32 %v518_v46, %v533_v44  ;;  %v600_v49 = vsel %vm548_vm2, %v590_v45, 0.0  ;;  %v555_v56 = vsel %vm548_vm2, %v544_v50, 0.0 }
 0x1e7   : > { %598 = vadd.xlane.f32.xlu0 %v597_v48  ;;  %601 = vadd.xlane.f32.xlu1 %v600_v49  ;;  %v831_v51 = vpop.f32.mrf.mxu1  ;;  %v633_v48 = vlaneseq }
 0x1e8   : > { %v591_v53 = vand.u32 2147483647, %v539_v47  ;;  %v545_v58 = vmul.f32 %v539_v47, %v539_v47 }
 0x1e9   : > { %v523_v54 = vpop.f32.mrf.mxu1 }
 0x1ea   : > { %v540_v55 = vsub.f32 %v523_v54, %v534_v52  ;;  %v603_v57 = vsel %vm548_vm2, %v591_v53, 0.0  ;;  %v558_v0 = vsel %vm548_vm2, %v545_v58, 0.0 }
 0x1eb   : > { %556 = vadd.xlane.f32.xlu0 %v555_v56  ;;  %604 = vadd.xlane.f32.xlu1 %v603_v57  ;;  %v834_v59 = vpop.f32.mrf.mxu1  ;;  %v634_v57 = vand.u32 127, %v633_v48 }
 0x1ec   : > { %v592_v61 = vand.u32 2147483647, %v540_v55  ;;  %v546_v2 = vmul.f32 %v540_v55, %v540_v55 }
 0x1ed   : > { %v526_v62 = vpop.f32.mrf.mxu1  ;;  %vm636_vm5 = vcmp.eq.s32.totalorder %v634_v57, 1  ;;  %vm635_vm6 = vcmp.eq.s32.totalorder %v634_v57, 0 }
 0x1ee   : > { %v541_v63 = vsub.f32 %v526_v62, %v535_v60  ;;  %v606_v1 = vsel %vm548_vm2, %v592_v61, 0.0  ;;  %v561_v5 = vsel %vm548_vm2, %v546_v2, 0.0 }
 0x1ef   : > { %559 = vadd.xlane.f32.xlu1 %v558_v0  ;;  %607 = vadd.xlane.f32.xlu0 %v606_v1  ;;  %v835_v3 = vpop.f32.mrf.mxu1 }
 0x1f0   : > { %v593_v4 = vand.u32 2147483647, %v541_v63  ;;  %v547_v7 = vmul.f32 %v541_v63, %v541_v63 }
 0x1f2   : > { %v609_v6 = vsel %vm548_vm2, %v593_v4, 0.0  ;;  %v564_v8 = vsel %vm548_vm2, %v547_v7, 0.0 }
 0x1f3   : > { %562 = vadd.xlane.f32.xlu0 %v561_v5  ;;  %610 = vadd.xlane.f32.xlu1 %v609_v6 }
 0x1f7   : > { %565 = vadd.xlane.f32.xlu1 %v564_v8 }
 0x268   : > { %v596_v9 = vpop.xlane.xlu0 %595 }
 0x26c   : > { %v551_v10 = vpop.xlane.xlu0 %550  ;;  %v554_v11 = vpop.xlane.xlu1 %553 }
 0x26d   : > { %v567_v15 = vadd.f32 %v554_v11, %v551_v10 }
 0x26f   : > { %v568_v21 = vrot.slane %v567_v15, 4 }
 0x270   : > { %v599_v12 = vpop.xlane.xlu0 %598  ;;  %v602_v13 = vpop.xlane.xlu1 %601 }
 0x271   : > { %v612_v14 = vadd.f32 %v599_v12, %v596_v9  ;;  %v569_v29 = vadd.f32 %v568_v21, %v567_v15 }
 0x273   : > { %v613_v18 = vrot.slane %v612_v14, 4  ;;  %v570_v37 = vrot.slane %v569_v29, 2 }
 0x274   : > { %v557_v16 = vpop.xlane.xlu0 %556  ;;  %v605_v17 = vpop.xlane.xlu1 %604 }
 0x275   : > { %v619_v19 = vadd.f32 %v605_v17, %v602_v13  ;;  %v614_v23 = vadd.f32 %v613_v18, %v612_v14  ;;  %v571_v47 = vadd.f32 %v570_v37, %v569_v29 }
 0x277   : > { %v620_v20 = vrot.slane %v619_v19, 4  ;;  %v615_v31 = vrot.slane %v614_v23, 2  ;;  %v572_v56 = vrot.slane %v571_v47, 1 }
 0x278   : > { %v560_v22 = vpop.xlane.xlu1 %559  ;;  %v608_v26 = vpop.xlane.xlu0 %607 }
 0x279   : > { %v621_v24 = vadd.f32 %v620_v20, %v619_v19  ;;  %v574_v25 = vadd.f32 %v560_v22, %v557_v16  ;;  %v616_v40 = vadd.f32 %v615_v31, %v614_v23  ;;  %v573_v0 = vadd.f32 %v572_v56, %v571_v47 }
 0x27b   : > { %v622_v27 = vrot.slane %v621_v24, 2  ;;  %v575_v28 = vrot.slane %v574_v25, 4  ;;  %v617_v49 = vrot.slane %v616_v40, 1 }
 0x27c   : > { %v611_v30 = vpop.xlane.xlu1 %610  ;;  %v563_v38 = vpop.xlane.xlu0 %562 }
 0x27d   : > { %v576_v32 = vadd.f32 %v575_v28, %v574_v25  ;;  %v626_v33 = vadd.f32 %v611_v30, %v608_v26  ;;  %v623_v34 = vadd.f32 %v622_v27, %v621_v24  ;;  %v618_v58 = vadd.f32 %v617_v49, %v616_v40 }
 0x27f   : > { %v577_v35 = vrot.slane %v576_v32, 2  ;;  %v627_v36 = vrot.slane %v626_v33, 4  ;;  %v624_v44 = vrot.slane %v623_v34, 1 }
 0x280   : > { %v566_v39 = vpop.xlane.xlu1 %565 }
 0x281   : > { %v628_v41 = vadd.f32 %v627_v36, %v626_v33  ;;  %v581_v42 = vadd.f32 %v566_v39, %v563_v38  ;;  %v578_v43 = vadd.f32 %v577_v35, %v576_v32  ;;  %v625_v53 = vadd.f32 %v624_v44, %v623_v34 }
 0x283   : > { %v629_v45 = vrot.slane %v628_v41, 2  ;;  %v582_v46 = vrot.slane %v581_v42, 4  ;;  %v579_v52 = vrot.slane %v578_v43, 1  ;;  %v641_v62 = vsel %vm640_vm3, %v625_v53, %v618_v58 }
 0x285   : > { %v630_v50 = vadd.f32 %v629_v45, %v628_v41  ;;  %v583_v51 = vadd.f32 %v582_v46, %v581_v42  ;;  %v580_v61 = vadd.f32 %v579_v52, %v578_v43 }
 0x287   : > { %v631_v54 = vrot.slane %v630_v50, 1  ;;  %v584_v55 = vrot.slane %v583_v51, 2  ;;  %v649_v3 = vsel %vm640_vm3, %v580_v61, %v573_v0 }
 0x289   : > { %v632_v59 = vadd.f32 %v631_v54, %v630_v50  ;;  %v585_v60 = vadd.f32 %v584_v55, %v583_v51 }
 0x28b   : > { %v586_v63 = vrot.slane %v585_v60, 1  ;;  %v643_v1 = vsel %vm642_vm4, %v632_v59, %v641_v62 }
 0x28c   : > { %v645_v4 = vsel %vm636_vm5, %v643_v1, 0.0 }
 0x28d   : > { %v587_v2 = vadd.f32 %v586_v63, %v585_v60 }
 0x28f   : > { %v650_v5 = vsel %vm642_vm4, %v587_v2, %v649_v3 }
 0x290   : > { %v652_v6 = vsel %vm635_vm6, %v650_v5, %v645_v4 }
 0x291   : > { %653 = vst [vmem:[%s259_s26] sm:$0x7] %v652_v6 }
 0x292 PF: > { %p17_p11 = scmp.ge.s32.totalorder %s1049_s20, 4   ;;  %s1247_s15 = smov %s984_s16 }
 0x293   : > { %s1248_s16 = smov %s988_s17  ;;  %s1249_s17 = smov %s1059_s23 }
 0x294   : > { %s1250_s18 = smov %s1049_s20  ;;  %19 = sbr.rel (!%p17_p11) target bundleno = 5 (0x5), region = 91 }
 0x299   :  { %673 = vsyncpa [#allocation3], 1 }
 0x29a   :  { %675 = vsyncpa [#allocation3 + $0x1], 1 }
 0x29b   :  { %676 = vsyncpa [#allocation5], 1 }
 0x29c   :  { %678 = vsyncpa [#allocation5 + $0x1], 1 }

</bundles_post_ra>
